<compile_context>
chip_gen: v7x
topology: tpu7x:2x2x1
jax: 0.10.0
libtpu: 0.0.40
codegen_flags: <defaults>
</compile_context>

<pallas_src>
import jax
import jax.numpy as jnp
from jax.experimental import pallas as pl
from jax.experimental.pallas import tpu as pltpu

# Model hyper-parameters (small, consistent with the module's __init__)
BATCH = 2
SEQ = 8
D_MODEL = 32
NUM_HEADS = 4
D_FF = 64
D_HEAD = D_MODEL // NUM_HEADS
EPS = 1e-5  # nn.LayerNorm default


def _layer_norm(x, gamma, beta):
    mu = jnp.mean(x, axis=-1, keepdims=True)
    var = jnp.mean((x - mu) ** 2, axis=-1, keepdims=True)
    return (x - mu) * jax.lax.rsqrt(var + EPS) * gamma + beta


def encoder_layer_kernel(x_ref, mask_ref,
                         wqkv_ref, bqkv_ref, wo_ref, bo_ref,
                         g1_ref, be1_ref,
                         w1_ref, bf1_ref, w2_ref, bf2_ref,
                         g2_ref, be2_ref,
                         out_ref, attn_ref):
    B, S, D = x_ref.shape
    x2 = x_ref[...].reshape(B * S, D)          # (B*S, D) for the linears
    mask_is_zero = mask_ref[...] == 0          # (B, S, S), hoisted, computed once

    # Fused QKV projection (one MXU push instead of three).
    # The 1/sqrt(d_head) scale is already folded into the Q slice of wqkv/bqkv.
    qkv = jnp.dot(x2, wqkv_ref[...], preferred_element_type=jnp.float32) + bqkv_ref[...]
    q = qkv[:, 0:D].reshape(B, S, D)
    k = qkv[:, D:2 * D].reshape(B, S, D)
    v = qkv[:, 2 * D:3 * D].reshape(B, S, D)

    neg_inf = jnp.float32(-1e9)

    # Per-head scores, each batched over B with a single 3-D einsum,
    # assembled into one (B, H, S, S) block.
    scores = jnp.stack(
        [jnp.einsum('bqd,bkd->bqk',
                    q[:, :, h * D_HEAD:(h + 1) * D_HEAD],
                    k[:, :, h * D_HEAD:(h + 1) * D_HEAD],
                    preferred_element_type=jnp.float32)
         for h in range(NUM_HEADS)],
        axis=1)                                                  # (B, H, S, S)
    scores = jnp.where(mask_is_zero[:, None, :, :], neg_inf, scores)

    # One numerically stable softmax over the whole (B, H, S, S) block.
    m = jnp.max(scores, axis=-1, keepdims=True)
    e = jnp.exp(scores - m)
    w = e / jnp.sum(e, axis=-1, keepdims=True)
    attn_ref[...] = w                                            # single store

    # Attention context per head (batched over B), concatenated along features.
    ctx = jnp.concatenate(
        [jnp.einsum('bqk,bkd->bqd',
                    w[:, h],
                    v[:, :, h * D_HEAD:(h + 1) * D_HEAD],
                    preferred_element_type=jnp.float32)
         for h in range(NUM_HEADS)],
        axis=-1).reshape(B * S, D)

    mha = jnp.dot(ctx, wo_ref[...], preferred_element_type=jnp.float32) + bo_ref[...]

    # ResidualLayerNorm #1: LayerNorm(dropout(mha) + x), dropout = identity
    norm1 = _layer_norm(mha + x2, g1_ref[...], be1_ref[...])

    # PWFFN: Linear -> ReLU -> (dropout id) -> Linear
    h1 = jnp.dot(norm1, w1_ref[...], preferred_element_type=jnp.float32) + bf1_ref[...]
    h1 = jnp.maximum(h1, 0.0)
    ff = jnp.dot(h1, w2_ref[...], preferred_element_type=jnp.float32) + bf2_ref[...]

    # ResidualLayerNorm #2: LayerNorm(dropout(ff) + norm1)
    norm2 = _layer_norm(ff + norm1, g2_ref[...], be2_ref[...])
    out_ref[...] = norm2.reshape(B, S, D)


def encoder_layer(x, mask, params):
    (wq, bq, wk, bk, wv, bv, wo, bo,
     g1, be1, w1, bf1, w2, bf2, g2, be2) = params
    B, S, D = x.shape

    # Host-side packing: fuse QKV weights and fold the softmax scale into Q.
    scale = 1.0 / jnp.sqrt(jnp.float32(D_HEAD))
    wqkv = jnp.concatenate([wq * scale, wk, wv], axis=1)   # (D, 3D)
    bqkv = jnp.concatenate([bq * scale, bk, bv], axis=1)   # (1, 3D)

    kernel_params = (wqkv, bqkv, wo, bo,
                     g1, be1, w1, bf1, w2, bf2, g2, be2)

    def full_spec(shape):
        n = len(shape)
        return pl.BlockSpec(shape, lambda i, _n=n: (0,) * _n)

    in_specs = ([full_spec((B, S, D)),          # x
                 full_spec((B, S, S))]          # mask
                + [full_spec(p.shape) for p in kernel_params])

    out_specs = [full_spec((B, S, D)),
                 full_spec((B, NUM_HEADS, S, S))]
    out_shape = [jax.ShapeDtypeStruct((B, S, D), jnp.float32),
                 jax.ShapeDtypeStruct((B, NUM_HEADS, S, S), jnp.float32)]

    # Single grid step: the whole (tiny) batch fits VMEM on every generation.
    return pl.pallas_call(
        encoder_layer_kernel,
        grid=(1,),
        in_specs=in_specs,
        out_specs=out_specs,
        out_shape=out_shape,
        compiler_params=pltpu.CompilerParams(
            dimension_semantics=("arbitrary",)),
    )(x, mask, *kernel_params)


def reference_encoder_layer(x, mask, params):
    """Pure-JAX reference matching the PyTorch semantics (dropout = identity)."""
    (wq, bq, wk, bk, wv, bv, wo, bo,
     g1, be1, w1, bf1, w2, bf2, g2, be2) = params
    B, S, D = x.shape

    q = x @ wq + bq
    k = x @ wk + bk
    v = x @ wv + bv

    def split(t):
        return t.reshape(B, S, NUM_HEADS, D_HEAD).transpose(0, 2, 1, 3)

    Q, K, V = split(q), split(k), split(v)                      # (B, H, S, dh)
    scores = (Q @ K.transpose(0, 1, 3, 2)) / jnp.sqrt(jnp.float32(D_HEAD))
    scores = jnp.where(mask[:, None, :, :] == 0, -1e9, scores)
    w = jax.nn.softmax(scores, axis=-1)                         # (B, H, S, S)
    ctx = (w @ V).transpose(0, 2, 1, 3).reshape(B, S, D)
    mha = ctx @ wo + bo

    def ln(t, g, b):
        mu = jnp.mean(t, axis=-1, keepdims=True)
        var = jnp.mean((t - mu) ** 2, axis=-1, keepdims=True)
        return (t - mu) * jax.lax.rsqrt(var + EPS) * g + b

    norm1 = ln(mha + x, g1, be1)
    ff = jnp.maximum(norm1 @ w1 + bf1, 0.0) @ w2 + bf2
    norm2 = ln(ff + norm1, g2, be2)
    return norm2, w


def make_params(key):
    ks = jax.random.split(key, 8)
    s = 0.1
    wq = jax.random.normal(ks[0], (D_MODEL, D_MODEL), jnp.float32) * s
    wk = jax.random.normal(ks[1], (D_MODEL, D_MODEL), jnp.float32) * s
    wv = jax.random.normal(ks[2], (D_MODEL, D_MODEL), jnp.float32) * s
    wo = jax.random.normal(ks[3], (D_MODEL, D_MODEL), jnp.float32) * s
    bq = jax.random.normal(ks[4], (1, D_MODEL), jnp.float32) * s
    bk = jnp.zeros((1, D_MODEL), jnp.float32)
    bv = jnp.zeros((1, D_MODEL), jnp.float32)
    bo = jnp.zeros((1, D_MODEL), jnp.float32)
    # LayerNorm params (PyTorch default init: gamma=1, beta=0)
    g1 = jnp.ones((1, D_MODEL), jnp.float32)
    be1 = jnp.zeros((1, D_MODEL), jnp.float32)
    g2 = jnp.ones((1, D_MODEL), jnp.float32)
    be2 = jnp.zeros((1, D_MODEL), jnp.float32)
    # PWFFN
    w1 = jax.random.normal(ks[5], (D_MODEL, D_FF), jnp.float32) * s
    bf1 = jax.random.normal(ks[6], (1, D_FF), jnp.float32) * s
    w2 = jax.random.normal(ks[7], (D_FF, D_MODEL), jnp.float32) * s
    bf2 = jnp.zeros((1, D_MODEL), jnp.float32)
    return (wq, bq, wk, bk, wv, bv, wo, bo,
            g1, be1, w1, bf1, w2, bf2, g2, be2)


if __name__ == "__main__":
    key = jax.random.PRNGKey(0)
    kx, km, kp = jax.random.split(key, 3)

    x = jax.random.normal(kx, (BATCH, SEQ, D_MODEL), jnp.float32)
    # padding-style mask: last two positions of batch 1 are masked out
    mask = jnp.ones((BATCH, SEQ, SEQ), jnp.float32)
    mask = mask.at[1, :, SEQ - 2:].set(0.0)

    params = make_params(kp)

    out, attn = encoder_layer(x, mask, params)
    out = jax.block_until_ready(out)
    attn = jax.block_until_ready(attn)

    ref_out, ref_attn = reference_encoder_layer(x, mask, params)
    assert out.shape == (BATCH, SEQ, D_MODEL)
    assert attn.shape == (BATCH, NUM_HEADS, SEQ, SEQ)
    assert jnp.allclose(out, ref_out, atol=1e-4, rtol=1e-4)
    assert jnp.allclose(attn, ref_attn, atol=1e-5, rtol=1e-4)

    print("KERNEL_OK")
</pallas_src>

<mosaic_0001>
module attributes {stable_mosaic.version = 11 : i64} {
  func.func @encoder_layer_kernel(%arg0: i32, %arg1: memref<2x8x32xf32, #tpu.memory_space<vmem>>, %arg2: memref<2x8x8xf32, #tpu.memory_space<vmem>>, %arg3: memref<32x96xf32, #tpu.memory_space<vmem>>, %arg4: memref<1x96xf32, #tpu.memory_space<vmem>>, %arg5: memref<32x32xf32, #tpu.memory_space<vmem>>, %arg6: memref<1x32xf32, #tpu.memory_space<vmem>>, %arg7: memref<1x32xf32, #tpu.memory_space<vmem>>, %arg8: memref<1x32xf32, #tpu.memory_space<vmem>>, %arg9: memref<32x64xf32, #tpu.memory_space<vmem>>, %arg10: memref<1x64xf32, #tpu.memory_space<vmem>>, %arg11: memref<64x32xf32, #tpu.memory_space<vmem>>, %arg12: memref<1x32xf32, #tpu.memory_space<vmem>>, %arg13: memref<1x32xf32, #tpu.memory_space<vmem>>, %arg14: memref<1x32xf32, #tpu.memory_space<vmem>>, %arg15: memref<2x8x32xf32, #tpu.memory_space<vmem>>, %arg16: memref<2x4x8x8xf32, #tpu.memory_space<vmem>>) attributes {dimension_semantics = [#tpu.dimension_semantics<arbitrary>], iteration_bounds = array<i64: 1>, scalar_prefetch = 0 : i64, scratch_operands = 0 : i64, tpu.core_type = #tpu.core_type<tc>, window_params = [{pipeline_mode = #tpu.pipeline_mode<synchronous>, transform_indices = @transform_0, window_bounds = array<i64: 2, 8, 32>}, {pipeline_mode = #tpu.pipeline_mode<synchronous>, transform_indices = @transform_1, window_bounds = array<i64: 2, 8, 8>}, {pipeline_mode = #tpu.pipeline_mode<synchronous>, transform_indices = @transform_2, window_bounds = array<i64: 32, 96>}, {pipeline_mode = #tpu.pipeline_mode<synchronous>, transform_indices = @transform_3, window_bounds = array<i64: 1, 96>}, {pipeline_mode = #tpu.pipeline_mode<synchronous>, transform_indices = @transform_4, window_bounds = array<i64: 32, 32>}, {pipeline_mode = #tpu.pipeline_mode<synchronous>, transform_indices = @transform_5, window_bounds = array<i64: 1, 32>}, {pipeline_mode = #tpu.pipeline_mode<synchronous>, transform_indices = @transform_6, window_bounds = array<i64: 1, 32>}, {pipeline_mode = #tpu.pipeline_mode<synchronous>, transform_indices = @transform_7, window_bounds = array<i64: 1, 32>}, {pipeline_mode = #tpu.pipeline_mode<synchronous>, transform_indices = @transform_8, window_bounds = array<i64: 32, 64>}, {pipeline_mode = #tpu.pipeline_mode<synchronous>, transform_indices = @transform_9, window_bounds = array<i64: 1, 64>}, {pipeline_mode = #tpu.pipeline_mode<synchronous>, transform_indices = @transform_10, window_bounds = array<i64: 64, 32>}, {pipeline_mode = #tpu.pipeline_mode<synchronous>, transform_indices = @transform_11, window_bounds = array<i64: 1, 32>}, {pipeline_mode = #tpu.pipeline_mode<synchronous>, transform_indices = @transform_12, window_bounds = array<i64: 1, 32>}, {pipeline_mode = #tpu.pipeline_mode<synchronous>, transform_indices = @transform_13, window_bounds = array<i64: 1, 32>}, {pipeline_mode = #tpu.pipeline_mode<synchronous>, transform_indices = @transform_14, window_bounds = array<i64: 2, 8, 32>}, {pipeline_mode = #tpu.pipeline_mode<synchronous>, transform_indices = @transform_15, window_bounds = array<i64: 2, 4, 8, 8>}]} {
    %c0 = arith.constant 0 : index
    %c0_0 = arith.constant 0 : index
    %c0_1 = arith.constant 0 : index
    %0 = vector.load %arg1[%c0, %c0_0, %c0_1] : memref<2x8x32xf32, #tpu.memory_space<vmem>>, vector<2x8x32xf32>
    %1 = vector.shape_cast %0 : vector<2x8x32xf32> to vector<16x32xf32>
    %c0_2 = arith.constant 0 : index
    %c0_3 = arith.constant 0 : index
    %c0_4 = arith.constant 0 : index
    %2 = vector.load %arg2[%c0_2, %c0_3, %c0_4] : memref<2x8x8xf32, #tpu.memory_space<vmem>>, vector<2x8x8xf32>
    %cst = arith.constant 0.000000e+00 : f32
    %3 = vector.broadcast %cst : f32 to vector<2x8x8xf32>
    %4 = arith.cmpf oeq, %2, %3 : vector<2x8x8xf32>
    %c0_5 = arith.constant 0 : index
    %c0_6 = arith.constant 0 : index
    %5 = vector.load %arg3[%c0_5, %c0_6] : memref<32x96xf32, #tpu.memory_space<vmem>>, vector<32x96xf32>
    %cst_7 = arith.constant dense<0.000000e+00> : vector<16x96xf32>
    %6 = tpu.matmul %1, %5, %cst_7 {dimension_numbers = #tpu.dot_dimension_numbers<[1], [0], [0], [1], [0, 0, 1, 1], [], []>} : vector<16x32xf32>, vector<32x96xf32>, vector<16x96xf32> -> vector<16x96xf32>
    %c0_8 = arith.constant 0 : index
    %c0_9 = arith.constant 0 : index
    %7 = vector.load %arg4[%c0_8, %c0_9] : memref<1x96xf32, #tpu.memory_space<vmem>>, vector<1x96xf32>
    %8 = vector.broadcast %7 : vector<1x96xf32> to vector<16x96xf32>
    %9 = arith.addf %6, %8 : vector<16x96xf32>
    %10 = vector.extract_strided_slice %9 {offsets = [0, 0], sizes = [16, 32], strides = [1, 1]} : vector<16x96xf32> to vector<16x32xf32>
    %11 = vector.shape_cast %10 : vector<16x32xf32> to vector<2x8x32xf32>
    %12 = vector.extract_strided_slice %9 {offsets = [0, 32], sizes = [16, 32], strides = [1, 1]} : vector<16x96xf32> to vector<16x32xf32>
    %13 = vector.shape_cast %12 : vector<16x32xf32> to vector<2x8x32xf32>
    %14 = vector.extract_strided_slice %9 {offsets = [0, 64], sizes = [16, 32], strides = [1, 1]} : vector<16x96xf32> to vector<16x32xf32>
    %15 = vector.shape_cast %14 : vector<16x32xf32> to vector<2x8x32xf32>
    %16 = vector.extract_strided_slice %11 {offsets = [0, 0, 0], sizes = [2, 8, 8], strides = [1, 1, 1]} : vector<2x8x32xf32> to vector<2x8x8xf32>
    %17 = vector.extract_strided_slice %13 {offsets = [0, 0, 0], sizes = [2, 8, 8], strides = [1, 1, 1]} : vector<2x8x32xf32> to vector<2x8x8xf32>
    "tpu.trace_start"() <{level = 10 : i32, message = "bqd,bkd->bqk"}> : () -> ()
    %cst_10 = arith.constant dense<0.000000e+00> : vector<2x8x8xf32>
    %18 = tpu.matmul %16, %17, %cst_10 {dimension_numbers = #tpu.dot_dimension_numbers<[2], [2], [1], [1], [0, 0, 0, 1, 1, 1], [0], [0]>} : vector<2x8x8xf32>, vector<2x8x8xf32>, vector<2x8x8xf32> -> vector<2x8x8xf32>
    "tpu.trace_stop"() : () -> ()
    %19 = vector.extract_strided_slice %11 {offsets = [0, 0, 8], sizes = [2, 8, 8], strides = [1, 1, 1]} : vector<2x8x32xf32> to vector<2x8x8xf32>
    %20 = vector.extract_strided_slice %13 {offsets = [0, 0, 8], sizes = [2, 8, 8], strides = [1, 1, 1]} : vector<2x8x32xf32> to vector<2x8x8xf32>
    "tpu.trace_start"() <{level = 10 : i32, message = "bqd,bkd->bqk"}> : () -> ()
    %cst_11 = arith.constant dense<0.000000e+00> : vector<2x8x8xf32>
    %21 = tpu.matmul %19, %20, %cst_11 {dimension_numbers = #tpu.dot_dimension_numbers<[2], [2], [1], [1], [0, 0, 0, 1, 1, 1], [0], [0]>} : vector<2x8x8xf32>, vector<2x8x8xf32>, vector<2x8x8xf32> -> vector<2x8x8xf32>
    "tpu.trace_stop"() : () -> ()
    %22 = vector.extract_strided_slice %11 {offsets = [0, 0, 16], sizes = [2, 8, 8], strides = [1, 1, 1]} : vector<2x8x32xf32> to vector<2x8x8xf32>
    %23 = vector.extract_strided_slice %13 {offsets = [0, 0, 16], sizes = [2, 8, 8], strides = [1, 1, 1]} : vector<2x8x32xf32> to vector<2x8x8xf32>
    "tpu.trace_start"() <{level = 10 : i32, message = "bqd,bkd->bqk"}> : () -> ()
    %cst_12 = arith.constant dense<0.000000e+00> : vector<2x8x8xf32>
    %24 = tpu.matmul %22, %23, %cst_12 {dimension_numbers = #tpu.dot_dimension_numbers<[2], [2], [1], [1], [0, 0, 0, 1, 1, 1], [0], [0]>} : vector<2x8x8xf32>, vector<2x8x8xf32>, vector<2x8x8xf32> -> vector<2x8x8xf32>
    "tpu.trace_stop"() : () -> ()
    %25 = vector.extract_strided_slice %11 {offsets = [0, 0, 24], sizes = [2, 8, 8], strides = [1, 1, 1]} : vector<2x8x32xf32> to vector<2x8x8xf32>
    %26 = vector.extract_strided_slice %13 {offsets = [0, 0, 24], sizes = [2, 8, 8], strides = [1, 1, 1]} : vector<2x8x32xf32> to vector<2x8x8xf32>
    "tpu.trace_start"() <{level = 10 : i32, message = "bqd,bkd->bqk"}> : () -> ()
    %cst_13 = arith.constant dense<0.000000e+00> : vector<2x8x8xf32>
    %27 = tpu.matmul %25, %26, %cst_13 {dimension_numbers = #tpu.dot_dimension_numbers<[2], [2], [1], [1], [0, 0, 0, 1, 1, 1], [0], [0]>} : vector<2x8x8xf32>, vector<2x8x8xf32>, vector<2x8x8xf32> -> vector<2x8x8xf32>
    "tpu.trace_stop"() : () -> ()
    %28 = vector.shape_cast %18 : vector<2x8x8xf32> to vector<2x1x8x8xf32>
    %29 = vector.shape_cast %21 : vector<2x8x8xf32> to vector<2x1x8x8xf32>
    %30 = vector.shape_cast %24 : vector<2x8x8xf32> to vector<2x1x8x8xf32>
    %31 = vector.shape_cast %27 : vector<2x8x8xf32> to vector<2x1x8x8xf32>
    %32 = tpu.concatenate %28, %29, %30, %31 in 1 : vector<2x1x8x8xf32>, vector<2x1x8x8xf32>, vector<2x1x8x8xf32>, vector<2x1x8x8xf32> -> vector<2x4x8x8xf32>
    %33 = vector.shape_cast %4 : vector<2x8x8xi1> to vector<2x1x8x8xi1>
    %cst_14 = arith.constant -1.000000e+09 : f32
    %34 = vector.shape_cast %33 : vector<2x1x8x8xi1> to vector<2x1x8x8xi1>
    %35 = vector.broadcast %34 : vector<2x1x8x8xi1> to vector<2x4x8x8xi1>
    %36 = vector.broadcast %cst_14 : f32 to vector<2x4x8x8xf32>
    %37 = arith.select %35, %36, %32 : vector<2x4x8x8xi1>, vector<2x4x8x8xf32>
    %cst_15 = arith.constant dense<0xFF800000> : vector<2x4x8xf32>
    %38 = vector.multi_reduction <maximumf>, %37, %cst_15 [3] : vector<2x4x8x8xf32> to vector<2x4x8xf32>
    %39 = vector.shape_cast %38 : vector<2x4x8xf32> to vector<2x4x8x1xf32>
    %40 = vector.broadcast %39 : vector<2x4x8x1xf32> to vector<2x4x8x8xf32>
    %41 = arith.subf %37, %40 : vector<2x4x8x8xf32>
    %42 = math.exp %41 : vector<2x4x8x8xf32>
    %cst_16 = arith.constant dense<0.000000e+00> : vector<2x4x8xf32>
    %43 = vector.multi_reduction <add>, %42, %cst_16 [3] : vector<2x4x8x8xf32> to vector<2x4x8xf32>
    %44 = vector.shape_cast %43 : vector<2x4x8xf32> to vector<2x4x8x1xf32>
    %45 = vector.broadcast %44 : vector<2x4x8x1xf32> to vector<2x4x8x8xf32>
    %46 = arith.divf %42, %45 : vector<2x4x8x8xf32>
    %c0_17 = arith.constant 0 : index
    %c0_18 = arith.constant 0 : index
    %c0_19 = arith.constant 0 : index
    %c0_20 = arith.constant 0 : index
    %47 = vector.load %arg16[%c0_17, %c0_18, %c0_19, %c0_20] : memref<2x4x8x8xf32, #tpu.memory_space<vmem>>, vector<2x4x8x8xf32>
    tpu.vector_store %arg16[%c0_17, %c0_18, %c0_19, %c0_20], %46 {strides = array<i32>} : memref<2x4x8x8xf32, #tpu.memory_space<vmem>>, vector<2x4x8x8xf32>,
    %48 = vector.extract_strided_slice %46 {offsets = [0, 0, 0, 0], sizes = [2, 1, 8, 8], strides = [1, 1, 1, 1]} : vector<2x4x8x8xf32> to vector<2x1x8x8xf32>
    %49 = vector.shape_cast %48 : vector<2x1x8x8xf32> to vector<2x8x8xf32>
    %50 = vector.extract_strided_slice %15 {offsets = [0, 0, 0], sizes = [2, 8, 8], strides = [1, 1, 1]} : vector<2x8x32xf32> to vector<2x8x8xf32>
    "tpu.trace_start"() <{level = 10 : i32, message = "bqk,bkd->bqd"}> : () -> ()
    %cst_21 = arith.constant dense<0.000000e+00> : vector<2x8x8xf32>
    %51 = tpu.matmul %49, %50, %cst_21 {dimension_numbers = #tpu.dot_dimension_numbers<[2], [1], [1], [2], [0, 0, 0, 1, 1, 2], [0], [0]>} : vector<2x8x8xf32>, vector<2x8x8xf32>, vector<2x8x8xf32> -> vector<2x8x8xf32>
    "tpu.trace_stop"() : () -> ()
    %52 = vector.extract_strided_slice %46 {offsets = [0, 1, 0, 0], sizes = [2, 1, 8, 8], strides = [1, 1, 1, 1]} : vector<2x4x8x8xf32> to vector<2x1x8x8xf32>
    %53 = vector.shape_cast %52 : vector<2x1x8x8xf32> to vector<2x8x8xf32>
    %54 = vector.extract_strided_slice %15 {offsets = [0, 0, 8], sizes = [2, 8, 8], strides = [1, 1, 1]} : vector<2x8x32xf32> to vector<2x8x8xf32>
    "tpu.trace_start"() <{level = 10 : i32, message = "bqk,bkd->bqd"}> : () -> ()
    %cst_22 = arith.constant dense<0.000000e+00> : vector<2x8x8xf32>
    %55 = tpu.matmul %53, %54, %cst_22 {dimension_numbers = #tpu.dot_dimension_numbers<[2], [1], [1], [2], [0, 0, 0, 1, 1, 2], [0], [0]>} : vector<2x8x8xf32>, vector<2x8x8xf32>, vector<2x8x8xf32> -> vector<2x8x8xf32>
    "tpu.trace_stop"() : () -> ()
    %56 = vector.extract_strided_slice %46 {offsets = [0, 2, 0, 0], sizes = [2, 1, 8, 8], strides = [1, 1, 1, 1]} : vector<2x4x8x8xf32> to vector<2x1x8x8xf32>
    %57 = vector.shape_cast %56 : vector<2x1x8x8xf32> to vector<2x8x8xf32>
    %58 = vector.extract_strided_slice %15 {offsets = [0, 0, 16], sizes = [2, 8, 8], strides = [1, 1, 1]} : vector<2x8x32xf32> to vector<2x8x8xf32>
    "tpu.trace_start"() <{level = 10 : i32, message = "bqk,bkd->bqd"}> : () -> ()
    %cst_23 = arith.constant dense<0.000000e+00> : vector<2x8x8xf32>
    %59 = tpu.matmul %57, %58, %cst_23 {dimension_numbers = #tpu.dot_dimension_numbers<[2], [1], [1], [2], [0, 0, 0, 1, 1, 2], [0], [0]>} : vector<2x8x8xf32>, vector<2x8x8xf32>, vector<2x8x8xf32> -> vector<2x8x8xf32>
    "tpu.trace_stop"() : () -> ()
    %60 = vector.extract_strided_slice %46 {offsets = [0, 3, 0, 0], sizes = [2, 1, 8, 8], strides = [1, 1, 1, 1]} : vector<2x4x8x8xf32> to vector<2x1x8x8xf32>
    %61 = vector.shape_cast %60 : vector<2x1x8x8xf32> to vector<2x8x8xf32>
    %62 = vector.extract_strided_slice %15 {offsets = [0, 0, 24], sizes = [2, 8, 8], strides = [1, 1, 1]} : vector<2x8x32xf32> to vector<2x8x8xf32>
    "tpu.trace_start"() <{level = 10 : i32, message = "bqk,bkd->bqd"}> : () -> ()
    %cst_24 = arith.constant dense<0.000000e+00> : vector<2x8x8xf32>
    %63 = tpu.matmul %61, %62, %cst_24 {dimension_numbers = #tpu.dot_dimension_numbers<[2], [1], [1], [2], [0, 0, 0, 1, 1, 2], [0], [0]>} : vector<2x8x8xf32>, vector<2x8x8xf32>, vector<2x8x8xf32> -> vector<2x8x8xf32>
    "tpu.trace_stop"() : () -> ()
    %64 = tpu.concatenate %51, %55, %59, %63 in 2 : vector<2x8x8xf32>, vector<2x8x8xf32>, vector<2x8x8xf32>, vector<2x8x8xf32> -> vector<2x8x32xf32>
    %65 = vector.shape_cast %64 : vector<2x8x32xf32> to vector<16x32xf32>
    %c0_25 = arith.constant 0 : index
    %c0_26 = arith.constant 0 : index
    %66 = vector.load %arg5[%c0_25, %c0_26] : memref<32x32xf32, #tpu.memory_space<vmem>>, vector<32x32xf32>
    %cst_27 = arith.constant dense<0.000000e+00> : vector<16x32xf32>
    %67 = tpu.matmul %65, %66, %cst_27 {dimension_numbers = #tpu.dot_dimension_numbers<[1], [0], [0], [1], [0, 0, 1, 1], [], []>} : vector<16x32xf32>, vector<32x32xf32>, vector<16x32xf32> -> vector<16x32xf32>
    %c0_28 = arith.constant 0 : index
    %c0_29 = arith.constant 0 : index
    %68 = vector.load %arg6[%c0_28, %c0_29] : memref<1x32xf32, #tpu.memory_space<vmem>>, vector<1x32xf32>
    %69 = vector.broadcast %68 : vector<1x32xf32> to vector<16x32xf32>
    %70 = arith.addf %67, %69 : vector<16x32xf32>
    %71 = arith.addf %70, %1 : vector<16x32xf32>
    %c0_30 = arith.constant 0 : index
    %c0_31 = arith.constant 0 : index
    %72 = vector.load %arg7[%c0_30, %c0_31] : memref<1x32xf32, #tpu.memory_space<vmem>>, vector<1x32xf32>
    %c0_32 = arith.constant 0 : index
    %c0_33 = arith.constant 0 : index
    %73 = vector.load %arg8[%c0_32, %c0_33] : memref<1x32xf32, #tpu.memory_space<vmem>>, vector<1x32xf32>
    %cst_34 = arith.constant dense<0.000000e+00> : vector<16xf32>
    %74 = vector.multi_reduction <add>, %71, %cst_34 [1] : vector<16x32xf32> to vector<16xf32>
    %75 = vector.shape_cast %74 : vector<16xf32> to vector<16x1xf32>
    %cst_35 = arith.constant 3.200000e+01 : f32
    %76 = vector.broadcast %cst_35 : f32 to vector<16x1xf32>
    %77 = arith.divf %75, %76 : vector<16x1xf32>
    %78 = vector.broadcast %77 : vector<16x1xf32> to vector<16x32xf32>
    %79 = arith.subf %71, %78 : vector<16x32xf32>
    %80 = arith.mulf %79, %79 : vector<16x32xf32>
    %cst_36 = arith.constant dense<0.000000e+00> : vector<16xf32>
    %81 = vector.multi_reduction <add>, %80, %cst_36 [1] : vector<16x32xf32> to vector<16xf32>
    %82 = vector.shape_cast %81 : vector<16xf32> to vector<16x1xf32>
    %cst_37 = arith.constant 3.200000e+01 : f32
    %83 = vector.broadcast %cst_37 : f32 to vector<16x1xf32>
    %84 = arith.divf %82, %83 : vector<16x1xf32>
    %85 = vector.broadcast %77 : vector<16x1xf32> to vector<16x32xf32>
    %86 = arith.subf %71, %85 : vector<16x32xf32>
    %cst_38 = arith.constant 9.99999974E-6 : f32
    %87 = vector.broadcast %cst_38 : f32 to vector<16x1xf32>
    %88 = arith.addf %84, %87 : vector<16x1xf32>
    %89 = math.rsqrt %88 : vector<16x1xf32>
    %90 = vector.broadcast %89 : vector<16x1xf32> to vector<16x32xf32>
    %91 = arith.mulf %86, %90 : vector<16x32xf32>
    %92 = vector.broadcast %72 : vector<1x32xf32> to vector<16x32xf32>
    %93 = arith.mulf %91, %92 : vector<16x32xf32>
    %94 = vector.broadcast %73 : vector<1x32xf32> to vector<16x32xf32>
    %95 = arith.addf %93, %94 : vector<16x32xf32>
    %c0_39 = arith.constant 0 : index
    %c0_40 = arith.constant 0 : index
    %96 = vector.load %arg9[%c0_39, %c0_40] : memref<32x64xf32, #tpu.memory_space<vmem>>, vector<32x64xf32>
    %cst_41 = arith.constant dense<0.000000e+00> : vector<16x64xf32>
    %97 = tpu.matmul %95, %96, %cst_41 {dimension_numbers = #tpu.dot_dimension_numbers<[1], [0], [0], [1], [0, 0, 1, 1], [], []>} : vector<16x32xf32>, vector<32x64xf32>, vector<16x64xf32> -> vector<16x64xf32>
    %c0_42 = arith.constant 0 : index
    %c0_43 = arith.constant 0 : index
    %98 = vector.load %arg10[%c0_42, %c0_43] : memref<1x64xf32, #tpu.memory_space<vmem>>, vector<1x64xf32>
    %99 = vector.broadcast %98 : vector<1x64xf32> to vector<16x64xf32>
    %100 = arith.addf %97, %99 : vector<16x64xf32>
    %cst_44 = arith.constant 0.000000e+00 : f32
    %101 = vector.broadcast %cst_44 : f32 to vector<16x64xf32>
    %102 = arith.maximumf %100, %101 : vector<16x64xf32>
    %c0_45 = arith.constant 0 : index
    %c0_46 = arith.constant 0 : index
    %103 = vector.load %arg11[%c0_45, %c0_46] : memref<64x32xf32, #tpu.memory_space<vmem>>, vector<64x32xf32>
    %cst_47 = arith.constant dense<0.000000e+00> : vector<16x32xf32>
    %104 = tpu.matmul %102, %103, %cst_47 {dimension_numbers = #tpu.dot_dimension_numbers<[1], [0], [0], [1], [0, 0, 1, 1], [], []>} : vector<16x64xf32>, vector<64x32xf32>, vector<16x32xf32> -> vector<16x32xf32>
    %c0_48 = arith.constant 0 : index
    %c0_49 = arith.constant 0 : index
    %105 = vector.load %arg12[%c0_48, %c0_49] : memref<1x32xf32, #tpu.memory_space<vmem>>, vector<1x32xf32>
    %106 = vector.broadcast %105 : vector<1x32xf32> to vector<16x32xf32>
    %107 = arith.addf %104, %106 : vector<16x32xf32>
    %108 = arith.addf %107, %95 : vector<16x32xf32>
    %c0_50 = arith.constant 0 : index
    %c0_51 = arith.constant 0 : index
    %109 = vector.load %arg13[%c0_50, %c0_51] : memref<1x32xf32, #tpu.memory_space<vmem>>, vector<1x32xf32>
    %c0_52 = arith.constant 0 : index
    %c0_53 = arith.constant 0 : index
    %110 = vector.load %arg14[%c0_52, %c0_53] : memref<1x32xf32, #tpu.memory_space<vmem>>, vector<1x32xf32>
    %cst_54 = arith.constant dense<0.000000e+00> : vector<16xf32>
    %111 = vector.multi_reduction <add>, %108, %cst_54 [1] : vector<16x32xf32> to vector<16xf32>
    %112 = vector.shape_cast %111 : vector<16xf32> to vector<16x1xf32>
    %cst_55 = arith.constant 3.200000e+01 : f32
    %113 = vector.broadcast %cst_55 : f32 to vector<16x1xf32>
    %114 = arith.divf %112, %113 : vector<16x1xf32>
    %115 = vector.broadcast %114 : vector<16x1xf32> to vector<16x32xf32>
    %116 = arith.subf %108, %115 : vector<16x32xf32>
    %117 = arith.mulf %116, %116 : vector<16x32xf32>
    %cst_56 = arith.constant dense<0.000000e+00> : vector<16xf32>
    %118 = vector.multi_reduction <add>, %117, %cst_56 [1] : vector<16x32xf32> to vector<16xf32>
    %119 = vector.shape_cast %118 : vector<16xf32> to vector<16x1xf32>
    %cst_57 = arith.constant 3.200000e+01 : f32
    %120 = vector.broadcast %cst_57 : f32 to vector<16x1xf32>
    %121 = arith.divf %119, %120 : vector<16x1xf32>
    %122 = vector.broadcast %114 : vector<16x1xf32> to vector<16x32xf32>
    %123 = arith.subf %108, %122 : vector<16x32xf32>
    %cst_58 = arith.constant 9.99999974E-6 : f32
    %124 = vector.broadcast %cst_58 : f32 to vector<16x1xf32>
    %125 = arith.addf %121, %124 : vector<16x1xf32>
    %126 = math.rsqrt %125 : vector<16x1xf32>
    %127 = vector.broadcast %126 : vector<16x1xf32> to vector<16x32xf32>
    %128 = arith.mulf %123, %127 : vector<16x32xf32>
    %129 = vector.broadcast %109 : vector<1x32xf32> to vector<16x32xf32>
    %130 = arith.mulf %128, %129 : vector<16x32xf32>
    %131 = vector.broadcast %110 : vector<1x32xf32> to vector<16x32xf32>
    %132 = arith.addf %130, %131 : vector<16x32xf32>
    %133 = vector.shape_cast %132 : vector<16x32xf32> to vector<2x8x32xf32>
    %c0_59 = arith.constant 0 : index
    %c0_60 = arith.constant 0 : index
    %c0_61 = arith.constant 0 : index
    %134 = vector.load %arg15[%c0_59, %c0_60, %c0_61] : memref<2x8x32xf32, #tpu.memory_space<vmem>>, vector<2x8x32xf32>
    tpu.vector_store %arg15[%c0_59, %c0_60, %c0_61], %133 {strides = array<i32>} : memref<2x8x32xf32, #tpu.memory_space<vmem>>, vector<2x8x32xf32>,
    return
  }
  func.func @transform_0(%arg0: i32) -> (i32, i32, i32) {
    %c0_i32 = arith.constant 0 : i32
    %c0_i32_0 = arith.constant 0 : i32
    %c0_i32_1 = arith.constant 0 : i32
    %c0_i32_2 = arith.constant 0 : i32
    return %c0_i32, %c0_i32_0, %c0_i32_1 : i32, i32, i32
  }
  func.func @transform_1(%arg0: i32) -> (i32, i32, i32) {
    %c0_i32 = arith.constant 0 : i32
    %c0_i32_0 = arith.constant 0 : i32
    %c0_i32_1 = arith.constant 0 : i32
    %c0_i32_2 = arith.constant 0 : i32
    return %c0_i32, %c0_i32_0, %c0_i32_1 : i32, i32, i32
  }
  func.func @transform_2(%arg0: i32) -> (i32, i32) {
    %c0_i32 = arith.constant 0 : i32
    %c0_i32_0 = arith.constant 0 : i32
    %c0_i32_1 = arith.constant 0 : i32
    return %c0_i32, %c0_i32_0 : i32, i32
  }
  func.func @transform_3(%arg0: i32) -> (i32, i32) {
    %c0_i32 = arith.constant 0 : i32
    %c0_i32_0 = arith.constant 0 : i32
    %c0_i32_1 = arith.constant 0 : i32
    return %c0_i32, %c0_i32_0 : i32, i32
  }
  func.func @transform_4(%arg0: i32) -> (i32, i32) {
    %c0_i32 = arith.constant 0 : i32
    %c0_i32_0 = arith.constant 0 : i32
    %c0_i32_1 = arith.constant 0 : i32
    return %c0_i32, %c0_i32_0 : i32, i32
  }
  func.func @transform_5(%arg0: i32) -> (i32, i32) {
    %c0_i32 = arith.constant 0 : i32
    %c0_i32_0 = arith.constant 0 : i32
    %c0_i32_1 = arith.constant 0 : i32
    return %c0_i32, %c0_i32_0 : i32, i32
  }
  func.func @transform_6(%arg0: i32) -> (i32, i32) {
    %c0_i32 = arith.constant 0 : i32
    %c0_i32_0 = arith.constant 0 : i32
    %c0_i32_1 = arith.constant 0 : i32
    return %c0_i32, %c0_i32_0 : i32, i32
  }
  func.func @transform_7(%arg0: i32) -> (i32, i32) {
    %c0_i32 = arith.constant 0 : i32
    %c0_i32_0 = arith.constant 0 : i32
    %c0_i32_1 = arith.constant 0 : i32
    return %c0_i32, %c0_i32_0 : i32, i32
  }
  func.func @transform_8(%arg0: i32) -> (i32, i32) {
    %c0_i32 = arith.constant 0 : i32
    %c0_i32_0 = arith.constant 0 : i32
    %c0_i32_1 = arith.constant 0 : i32
    return %c0_i32, %c0_i32_0 : i32, i32
  }
  func.func @transform_9(%arg0: i32) -> (i32, i32) {
    %c0_i32 = arith.constant 0 : i32
    %c0_i32_0 = arith.constant 0 : i32
    %c0_i32_1 = arith.constant 0 : i32
    return %c0_i32, %c0_i32_0 : i32, i32
  }
  func.func @transform_10(%arg0: i32) -> (i32, i32) {
    %c0_i32 = arith.constant 0 : i32
    %c0_i32_0 = arith.constant 0 : i32
    %c0_i32_1 = arith.constant 0 : i32
    return %c0_i32, %c0_i32_0 : i32, i32
  }
  func.func @transform_11(%arg0: i32) -> (i32, i32) {
    %c0_i32 = arith.constant 0 : i32
    %c0_i32_0 = arith.constant 0 : i32
    %c0_i32_1 = arith.constant 0 : i32
    return %c0_i32, %c0_i32_0 : i32, i32
  }
  func.func @transform_12(%arg0: i32) -> (i32, i32) {
    %c0_i32 = arith.constant 0 : i32
    %c0_i32_0 = arith.constant 0 : i32
    %c0_i32_1 = arith.constant 0 : i32
    return %c0_i32, %c0_i32_0 : i32, i32
  }
  func.func @transform_13(%arg0: i32) -> (i32, i32) {
    %c0_i32 = arith.constant 0 : i32
    %c0_i32_0 = arith.constant 0 : i32
    %c0_i32_1 = arith.constant 0 : i32
    return %c0_i32, %c0_i32_0 : i32, i32
  }
  func.func @transform_14(%arg0: i32) -> (i32, i32, i32) {
    %c0_i32 = arith.constant 0 : i32
    %c0_i32_0 = arith.constant 0 : i32
    %c0_i32_1 = arith.constant 0 : i32
    %c0_i32_2 = arith.constant 0 : i32
    return %c0_i32, %c0_i32_0, %c0_i32_1 : i32, i32, i32
  }
  func.func @transform_15(%arg0: i32) -> (i32, i32, i32, i32) {
    %c0_i32 = arith.constant 0 : i32
    %c0_i32_0 = arith.constant 0 : i32
    %c0_i32_1 = arith.constant 0 : i32
    %c0_i32_2 = arith.constant 0 : i32
    %c0_i32_3 = arith.constant 0 : i32
    return %c0_i32, %c0_i32_0, %c0_i32_1, %c0_i32_2 : i32, i32, i32, i32
  }
}

</mosaic_0001>

<bundles_post_ra>
// kernel: tpu_custom_call.1
= control target key start
LH: loop header
LB: loop body
LE: loop exit
PB: predicated region body
PF: predicated region fallthrough
CT: control target
= control target key end

     0   :  { %21 = vsyncpa [#allocation3], 0  ;;  %s2807_s0 = inlined_call_operand.hbm [shape: f32[2,8,32], index: 0, kind: input, shape index: {}]   ;;  %s2808_s1 = inlined_call_operand.hbm [shape: f32[2,8,8], index: 1, kind: input, shape index: {}]   ;;  %s2809_s2 = inlined_call_operand.vmem [shape: f32[32,96], index: 2, kind: input, shape index: {}]   ;;  %s2810_s3 = inlined_call_operand.vmem [shape: f32[1,96], index: 3, kind: input, shape index: {}]   ;;  %s2811_s4 = inlined_call_operand.vmem [shape: f32[32,32], index: 4, kind: input, shape index: {}]   ;;  %s2812_s5 = inlined_call_operand.vmem [shape: f32[1,32], index: 5, kind: input, shape index: {}]   ;;  %s2813_s6 = inlined_call_operand.vmem [shape: f32[1,32], index: 6, kind: input, shape index: {}]   ;;  %s2814_s7 = inlined_call_operand.vmem [shape: f32[1,32], index: 7, kind: input, shape index: {}]   ;;  %s2815_s8 = inlined_call_operand.vmem [shape: f32[32,64], index: 8, kind: input, shape index: {}]   ;;  %s2816_s9 = inlined_call_operand.vmem [shape: f32[1,64], index: 9, kind: input, shape index: {}]   ;;  %s2817_s10 = inlined_call_operand.vmem [shape: f32[64,32], index: 10, kind: input, shape index: {}]   ;;  %s2818_s11 = inlined_call_operand.vmem [shape: f32[1,32], index: 11, kind: input, shape index: {}]   ;;  %s2819_s12 = inlined_call_operand.vmem [shape: f32[1,32], index: 12, kind: input, shape index: {}]   ;;  %s2820_s13 = inlined_call_operand.vmem [shape: f32[1,32], index: 13, kind: input, shape index: {}]   ;;  %s2821_s14 = inlined_call_operand.hbm [shape: f32[2,8,32], index: 14, kind: output, shape index: {0}]   ;;  %s2822_s15 = inlined_call_operand.hbm [shape: f32[2,4,8,8], index: 15, kind: output, shape index: {1}]  }
   0x1   :  { %22 = vsyncpa [#allocation6], 0 }
   0x2   :  { %23 = vsyncpa [#allocation4], 0 }
   0x3   :  { %24 = vsyncpa [#allocation9], 0  ;;  %s2390_s18 = smov [#allocation2]   ;;  %s2294_s22 = scalar_lea.hbm %s2807_s0, 256 }
   0x4   :  { %s30_s19 = sshll.u32 %s2390_s18, 4  ;;  %p2295_p0 = scmp.ne.s32.totalorder %s2807_s0, %s2294_s22  ;;  %s31_s19 = int_to_ptr.vmem [resolvable:$true] %s30_s19 }
   0x5   :  { %p2298_p1 = scmp.lt.u32.totalorder %s2294_s22, %s2807_s0 }
   0x7   :  { %p2300_p2 = pnand %p2298_p1, %p2295_p0 }
   0x9   :  { %2303 = shalt.err (!%p2300_p2)
}
   0xa   :  { %s2304_s27 = scalar_lea.vmem %s31_s19, 256  ;;  %p2309_p4 = scmp.lt.s32.totalorder %s31_s19, %s31_s19 }
   0xb   :  { %p2305_p3 = scmp.ne.s32.totalorder %s31_s19, %s2304_s27  ;;  %p2310_p5 = scmp.lt.s32.totalorder %s2304_s27, %s2304_s27 }
   0xd   :  { %p2311_p6 = por %p2310_p5, %p2309_p4 }
   0xf   :  { %p2312_p7 = pnand %p2311_p6, %p2305_p3 }
  0x11   :  { %2315 = shalt.err (!%p2312_p7)
}
  0x12   :  { %s2391_s28 = smov 128   ;;  %s2392_s29 = smov 8  }
  0x13   :  { %36 = dma.hbm_to_vmem [thread:$0]  %s2807_s0, 256, %s31_s19, [#allocation3], %s2391_s28, %s2391_s28, %s2392_s29  }
  0x14   :  { %s2393_s17 = smov [#allocation5]   ;;  %s2316_s22 = scalar_lea.hbm %s2808_s1, 256 }
  0x15   :  { %s42_s18 = sshll.u32 %s2393_s17, 4  ;;  %p2317_p8 = scmp.ne.s32.totalorder %s2808_s1, %s2316_s22  ;;  %s43_s18 = int_to_ptr.vmem [resolvable:$true] %s42_s18 }
  0x16   :  { %p2320_p9 = scmp.lt.u32.totalorder %s2316_s22, %s2808_s1 }
  0x18   :  { %p2322_p10 = pnand %p2320_p9, %p2317_p8 }
  0x1a   :  { %2325 = shalt.err (!%p2322_p10)
}
  0x1b   :  { %s2326_s27 = scalar_lea.vmem %s43_s18, 256  ;;  %p2331_p12 = scmp.lt.s32.totalorder %s43_s18, %s43_s18 }
  0x1c   :  { %p2327_p11 = scmp.ne.s32.totalorder %s43_s18, %s2326_s27  ;;  %p2332_p13 = scmp.lt.s32.totalorder %s2326_s27, %s2326_s27 }
  0x1e   :  { %p2333_p0 = por %p2332_p13, %p2331_p12 }
  0x20   :  { %p2334_p1 = pnand %p2333_p0, %p2327_p11 }
  0x22   :  { %2337 = shalt.err (!%p2334_p1)
}
  0x23   :  { %48 = dma.hbm_to_vmem [thread:$0]  %s2808_s1, 256, %s43_s18, [#allocation6], %s2391_s28, %s2391_s28, %s2392_s29  }
  0x24   :  { %2382 = dma.done.wait [#allocation3], 256  }
  0x25   :  { %2383 = vsyncadd [#allocation3], 4294967040 }
  0x26   :  { %2384 = dma.done.wait [#allocation6], 256  }
  0x27   :  { %2385 = vsyncadd [#allocation6], 4294967040  ;;  %vm96_vm0 = vcmask 261120   ;;  %v85_v0 = vld [vmem:[%s2809_s2] sm:$0xff]  ;;  %v86_v1 = vld [vmem:[%s2809_s2 + $0x8] sm:$0xff]  ;;  %v2394_v8 = vmov 0.0  }
  0x28   :  { %v87_v2 = vld [vmem:[%s2809_s2 + $0x10] sm:$0xff]  ;;  %v2193_v3 = vpack.c.bf16 %v86_v1, %v85_v0  ;;  %v88_v4 = vld [vmem:[%s2809_s2 + $0x18] sm:$0xff]  ;;  %v2533_v5 = vld [vmem:[#allocation2] sm:$0xff]  ;;  %2082 = vmatprep.subr.mxu0 %v2394_v8  ;;  %vm2395_vm1 = vmmov 0   ;;  %s2396_s24 = smov 88   ;;  %s2397_s25 = smov 96  }
  0x29   :  { %v2197_v6 = vpack.c.bf16 %v88_v4, %v87_v2  ;;  %2069 = vmatprep.mubr.msk.f32.mxu1 %vm96_vm0, %v2533_v5  ;;  %v2537_v7 = vld [vmem:[#allocation2 + $0x8] sm:$0xff]  ;;  %2084 = vmatprep.mubr.msk.f32.mxu0 %vm2395_vm1, %v2394_v8  ;;  %v1961_v9 = vld [vmem:[%s2810_s3] ss:$0 sm:$0xff]  ;;  %s2398_s26 = smov 120   ;;  %s2399_s27 = smov 80   ;;  %vm181_vm2 = vcmask 64512  }
  0x2a   :  { %2194 = vmatprep.subr.bf16.mxu1 %v2193_v3  ;;  %s2400_s3 = smov 112   ;;  %s2401_s0 = smov 72   ;;  %v81_v28 = vld [vmem:[#allocation5] sm:$0xff]  ;;  %v82_v29 = vld [vmem:[#allocation5 + $0x8] sm:$0xff]  ;;  %vm1543_vm5 = vcmask 130048   ;;  %vm1546_vm6 = vcmask 195584  }
  0x2b   :  { %2196 = vmatpush3.bf16.msra.mxu1 %v2193_v3  ;;  %s2402_s19 = smov 104   ;;  %vm83_vm3 = vcmp.eq.f32.partialorder %v81_v28, 0.0  ;;  %vm84_vm4 = vcmp.eq.f32.partialorder %v82_v29, 0.0  ;;  %s2403_s30 = smov 64   ;;  %vm1797_vm7 = vcmask 523264  }
  0x2c   :  { %2198 = vmatprep.subr.bf16.mxu1 %v2197_v6  ;;  %s2404_s16 = smov 56   ;;  %s2405_s17 = smov 48  }
  0x2d   :  { %s2406_s20 = smov 40  }
  0x2f   :  { %2200 = vmatpush3.bf16.msra.mxu1 %v2197_v6 }
  0x30   :  { %2072 = vmatprep.subr.mxu1 %v2394_v8 }
  0x32   :  { %2070 = vmatmul.mubr.msk.f32.vlgmr.msra.gmra.mrb[0].mxu1 %vm96_vm0, %v2537_v7 }
  0x33   :  { %2074 = vmatprep.mubr.msk.f32.mxu1 %vm2395_vm1, %v2394_v8 }
 0x105   :  { %v2071_v10 = vpop.f32.mrb[0].mxu1 }
 0x106   :  { %v2550_v11 = vadd.f32 %v2071_v10, %v1961_v9  ;;  %v169_v12 = vpop.f32.mrb[1].mxu1 }
 0x107   :  { %v2554_v13 = vadd.f32 %v1961_v9, %v169_v12 }
 0x108   :  { %413 = vrot.lane.b32.xlu1 %v2550_v11, %s2396_s24  ;;  %257 = vrot.lane.b32.xlu0 %v2550_v11, %s2397_s25 }
 0x10c   :  { %411 = vrot.lane.b32.xlu1 %v2550_v11, %s2398_s26  ;;  %179 = vrot.lane.b32.xlu0 %v2554_v13, %s2397_s25 }
 0x110   :  { %569 = vrot.lane.b32.xlu1 %v2550_v11, %s2399_s27  ;;  %333 = vrot.lane.b32.xlu0 %v2554_v13, %s2398_s26  ;;  %s2407_s26 = smov 16  }
 0x114   :  { %335 = vrot.lane.b32.xlu1 %v2554_v13, %s2396_s24  ;;  %491 = vrot.lane.b32.xlu0 %v2554_v13, %s2399_s27 }
 0x118   :  { %567 = vrot.lane.b32.xlu1 %v2550_v11, %s2400_s3  ;;  %489 = vrot.lane.b32.xlu0 %v2554_v13, %s2400_s3 }
 0x11c   :  { %725 = vrot.lane.b32.xlu1 %v2550_v11, %s2401_s0  ;;  %647 = vrot.lane.b32.xlu0 %v2554_v13, %s2401_s0 }
 0x120   :  { %723 = vrot.lane.b32.xlu1 %v2550_v11, %s2402_s19  ;;  %645 = vrot.lane.b32.xlu0 %v2554_v13, %s2402_s19 }
 0x17a   :  { %v414_v14 = vpop.permute.xlu1 %413  ;;  %v258_v15 = vpop.permute.xlu0 %257 }
 0x17e   :  { %v412_v16 = vpop.permute.xlu1 %411  ;;  %v180_v17 = vpop.permute.xlu0 %179 }
 0x17f   :  { %2073 = vmatpush3.xpose.msk.msra.mxu1 %vm181_vm2, %v180_v17 }
 0x180   :  { %2077 = vmatprep.subr.mxu1 %v2394_v8 }
 0x182   :  { %v570_v18 = vpop.permute.xlu1 %569  ;;  %2075 = vmatmul.mubr.msk.f32.vlgmr.msra.gmra.mrb[2].mxu1 %vm181_vm2, %v2554_v13  ;;  %v334_v19 = vpop.permute.xlu0 %333 }
 0x183   :  { %2078 = vmatpush3.xpose.msk.msra.mxu1 %vm181_vm2, %v258_v15  ;;  %2079 = vmatprep.mubr.msk.f32.mxu1 %vm2395_vm1, %v2394_v8 }
 0x184   :  { %2087 = vmatprep.subr.mxu1 %v2394_v8 }
 0x186   :  { %v336_v20 = vpop.permute.xlu1 %335  ;;  %2080 = vmatmul.mubr.msk.f32.vlgmr.msra.gmra.mrb[4].mxu1 %vm181_vm2, %v2550_v11  ;;  %v492_v21 = vpop.permute.xlu0 %491 }
 0x187   :  { %2083 = vmatpush3.xpose.msk.msra.mxu0 %vm181_vm2, %v336_v20  ;;  %2088 = vmatpush3.xpose.msk.msra.mxu1 %vm181_vm2, %v414_v14 }
 0x188   :  { %2089 = vmatprep.mubr.msk.f32.mxu1 %vm2395_vm1, %v2394_v8  ;;  %2092 = vmatprep.subr.mxu0 %v2394_v8 }
 0x189   :  { %2097 = vmatprep.subr.mxu1 %v2394_v8 }
 0x18a   :  { %v568_v22 = vpop.permute.xlu1 %567  ;;  %2085 = vmatmul.mubr.msk.f32.vlgmr.msra.gmra.mrb[0].mxu0 %vm181_vm2, %v334_v19  ;;  %2090 = vmatmul.mubr.msk.f32.vlgmr.msra.gmra.mrb[6].mxu1 %vm181_vm2, %v412_v16  ;;  %v490_v23 = vpop.permute.xlu0 %489 }
 0x18b   :  { %2093 = vmatpush3.xpose.msk.msra.mxu0 %vm181_vm2, %v492_v21  ;;  %2098 = vmatpush3.xpose.msk.msra.mxu1 %vm181_vm2, %v570_v18 }
 0x18c   :  { %2094 = vmatprep.mubr.msk.f32.mxu0 %vm2395_vm1, %v2394_v8  ;;  %2099 = vmatprep.mubr.msk.f32.mxu1 %vm2395_vm1, %v2394_v8 }
 0x18d   :  { %2102 = vmatprep.subr.mxu0 %v2394_v8  ;;  %2107 = vmatprep.subr.mxu1 %v2394_v8 }
 0x18e   :  { %v726_v24 = vpop.permute.xlu1 %725  ;;  %2095 = vmatmul.mubr.msk.f32.vlgmr.msra.gmra.mrb[2].mxu0 %vm181_vm2, %v490_v23  ;;  %2100 = vmatmul.mubr.msk.f32.vlgmr.msra.gmra.mrb[8].mxu1 %vm181_vm2, %v568_v22  ;;  %v648_v25 = vpop.permute.xlu0 %647 }
 0x18f   :  { %2103 = vmatpush3.xpose.msk.msra.mxu0 %vm181_vm2, %v648_v25  ;;  %2108 = vmatpush3.xpose.msk.msra.mxu1 %vm181_vm2, %v726_v24 }
 0x190   :  { %2104 = vmatprep.mubr.msk.f32.mxu0 %vm2395_vm1, %v2394_v8  ;;  %2109 = vmatprep.mubr.msk.f32.mxu1 %vm2395_vm1, %v2394_v8 }
 0x191   :  { %2112 = vmatprep.subr.mxu0 %v2394_v8  ;;  %2117 = vmatprep.subr.mxu1 %v2394_v8 }
 0x192   :  { %v724_v26 = vpop.permute.xlu1 %723  ;;  %v646_v27 = vpop.permute.xlu0 %645 }
 0x193   :  { %2105 = vmatmul.mubr.msk.f32.vlgmr.msra.gmra.mrb[4].mxu0 %vm181_vm2, %v646_v27  ;;  %2110 = vmatmul.mubr.msk.f32.vlgmr.msra.gmra.mrb[10].mxu1 %vm181_vm2, %v724_v26 }
 0x194   :  { %2114 = vmatprep.mubr.msk.f32.mxu0 %vm2395_vm1, %v2394_v8  ;;  %2119 = vmatprep.mubr.msk.f32.mxu1 %vm2395_vm1, %v2394_v8 }
 0x255   :  { %v252_v30 = vpop.f32.mrb[2].mxu1 }
 0x256   :  { %v805_v31 = vsel %vm83_vm3, -1e+09, %v252_v30  ;;  %v2076_v32 = vpop.f32.mrb[3].mxu1 }
 0x257   :  { %v813_v33 = vsel %vm181_vm2, %v805_v31, -inf }
 0x258   :  { %814 = vmax.xlane.f32.xlu0 %v813_v33 }
 0x259   :  { %v329_v34 = vpop.f32.mrb[4].mxu1 }
 0x25a   :  { %v809_v35 = vsel %vm84_vm4, -1e+09, %v329_v34  ;;  %v2081_v36 = vpop.f32.mrb[5].mxu1 }
 0x25b   :  { %v825_v37 = vsel %vm181_vm2, %v809_v35, -inf }
 0x25c   :  { %826 = vmax.xlane.f32.xlu1 %v825_v37 }
 0x25d   :  { %v407_v38 = vpop.f32.mrb[0].mxu0  ;;  %v485_v39 = vpop.f32.mrb[6].mxu1 }
 0x25e   :  { %v806_v40 = vsel %vm83_vm3, -1e+09, %v407_v38  ;;  %v2086_v41 = vpop.f32.mrb[1].mxu0  ;;  %v2091_v42 = vpop.f32.mrb[7].mxu1  ;;  %v810_v44 = vsel %vm84_vm4, -1e+09, %v485_v39 }
 0x25f   :  { %v816_v43 = vsel %vm181_vm2, %v806_v40, -inf  ;;  %v828_v50 = vsel %vm181_vm2, %v810_v44, -inf }
 0x260   :  { %817 = vmax.xlane.f32.xlu0 %v816_v43 }
 0x261   :  { %v563_v45 = vpop.f32.mrb[2].mxu0  ;;  %v641_v46 = vpop.f32.mrb[8].mxu1 }
 0x262   :  { %v807_v47 = vsel %vm83_vm3, -1e+09, %v563_v45  ;;  %v2096_v48 = vpop.f32.mrb[3].mxu0  ;;  %v2101_v49 = vpop.f32.mrb[9].mxu1  ;;  %v811_v52 = vsel %vm84_vm4, -1e+09, %v641_v46 }
 0x263   :  { %v819_v51 = vsel %vm181_vm2, %v807_v47, -inf  ;;  %v831_v58 = vsel %vm181_vm2, %v811_v52, -inf }
 0x264   :  { %829 = vmax.xlane.f32.xlu0 %v828_v50  ;;  %820 = vmax.xlane.f32.xlu1 %v819_v51 }
 0x266   :  { %v719_v53 = vpop.f32.mrb[4].mxu0  ;;  %v797_v54 = vpop.f32.mrb[10].mxu1 }
 0x267   :  { %v808_v55 = vsel %vm83_vm3, -1e+09, %v719_v53  ;;  %v2106_v56 = vpop.f32.mrb[5].mxu0  ;;  %v2111_v57 = vpop.f32.mrb[11].mxu1  ;;  %v812_v59 = vsel %vm84_vm4, -1e+09, %v797_v54 }
 0x268   :  { %832 = vmax.xlane.f32.xlu0 %v831_v58  ;;  %v822_v60 = vsel %vm181_vm2, %v808_v55, -inf  ;;  %v834_v61 = vsel %vm181_vm2, %v812_v59, -inf }
 0x269   :  { %823 = vmax.xlane.f32.xlu1 %v822_v60 }
 0x26c   :  { %835 = vmax.xlane.f32.xlu0 %v834_v61 }
 0x27a   :  { %909 = vrot.lane.b32.xlu1 %v2554_v13, %s2403_s30 }
 0x27e   :  { %1061 = vrot.lane.b32.xlu1 %v2554_v13, %s2404_s16 }
 0x282   :  { %985 = vrot.lane.b32.xlu0 %v2550_v11, %s2403_s30  ;;  %1137 = vrot.lane.b32.xlu1 %v2550_v11, %s2404_s16 }
 0x286   :  { %1213 = vrot.lane.b32.xlu0 %v2554_v13, %s2405_s17  ;;  %1289 = vrot.lane.b32.xlu1 %v2550_v11, %s2405_s17 }
 0x2e5   :  { %v815_v62 = vpop.xlane.xlu0 %814 }
 0x2e6   :  { %v837_v63 = vsub.f32 %v805_v31, %v815_v62 }
 0x2e8   :  { %v845_v0 = vmul.f32 1.442695, %v837_v63 }
 0x2e9   :  { %v827_v1 = vpop.xlane.xlu1 %826 }
 0x2ea   :  { %2254 = vpow2.f32 %v845_v0  ;;  %v841_v2 = vsub.f32 %v809_v35, %v827_v1 }
 0x2ec   :  { %v853_v3 = vmul.f32 1.442695, %v841_v2 }
 0x2ed   :  { %v818_v4 = vpop.xlane.xlu0 %817 }
 0x2ee   :  { %2256 = vpow2.f32 %v853_v3  ;;  %v838_v6 = vsub.f32 %v806_v40, %v818_v4 }
 0x2f0   :  { %v847_v9 = vmul.f32 1.442695, %v838_v6 }
 0x2f1   :  { %v821_v10 = vpop.xlane.xlu1 %820  ;;  %v830_v12 = vpop.xlane.xlu0 %829 }
 0x2f2   :  { %2258 = vpow2.f32 %v847_v9  ;;  %v839_v14 = vsub.f32 %v807_v47, %v821_v10  ;;  %v842_v15 = vsub.f32 %v810_v44, %v830_v12 }
 0x2f4   :  { %v2255_v16 = vpop.eup %2254  ;;  %v849_v17 = vmul.f32 1.442695, %v839_v14  ;;  %v855_v18 = vmul.f32 1.442695, %v842_v15  ;;  %v1549_v15 = vld [vmem:[%s2811_s4] sm:$0xff] }
 0x2f5   :  { %v833_v19 = vpop.xlane.xlu0 %832  ;;  %v861_v20 = vsel %vm181_vm2, %v2255_v16, 0.0 }
 0x2f6   :  { %2260 = vpow2.f32 %v849_v17  ;;  %v843_v21 = vsub.f32 %v811_v52, %v833_v19  ;;  %v824_v22 = vpop.xlane.xlu1 %823  ;;  %862 = vadd.xlane.f32.xlu1 %v861_v20  ;;  %v1552_v20 = vld [vmem:[%s2811_s4 + $0x18] sm:$0xff] }
 0x2f7   :  { %2262 = vpow2.f32 %v855_v18  ;;  %v840_v23 = vsub.f32 %v808_v55, %v824_v22 }
 0x2f8   :  { %v2257_v24 = vpop.eup %2256  ;;  %v857_v25 = vmul.f32 1.442695, %v843_v21 }
 0x2f9   :  { %v851_v26 = vmul.f32 1.442695, %v840_v23  ;;  %v836_v27 = vpop.xlane.xlu0 %835  ;;  %v873_v28 = vsel %vm181_vm2, %v2257_v24, 0.0 }
 0x2fa   :  { %2264 = vpow2.f32 %v857_v25  ;;  %v844_v29 = vsub.f32 %v812_v59, %v836_v27  ;;  %874 = vadd.xlane.f32.xlu0 %v873_v28  ;;  %v910_v30 = vpop.permute.xlu1 %909 }
 0x2fb   :  { %2266 = vpow2.f32 %v851_v26  ;;  %2113 = vmatpush3.msra.mxu0 %v910_v30 }
 0x2fc   :  { %v2259_v31 = vpop.eup %2258  ;;  %v859_v32 = vmul.f32 1.442695, %v844_v29  ;;  %2122 = vmatprep.subr.mxu0 %v2394_v8 }
 0x2fd   :  { %v986_v33 = vpop.permute.xlu0 %985  ;;  %v864_v34 = vsel %vm181_vm2, %v2259_v31, 0.0 }
 0x2fe   :  { %2268 = vpow2.f32 %v859_v32  ;;  %865 = vadd.xlane.f32.xlu1 %v864_v34  ;;  %2118 = vmatpush3.msra.mxu1 %v986_v33  ;;  %v1062_v45 = vpop.permute.xlu1 %1061 }
 0x2ff   :  { %2127 = vmatprep.subr.mxu1 %v2394_v8 }
 0x300   :  { %v2261_v35 = vpop.eup %2260 }
 0x301   :  { %v2263_v36 = vpop.eup %2262  ;;  %v867_v37 = vsel %vm181_vm2, %v2261_v35, 0.0  ;;  %v1214_v48 = vpop.permute.xlu0 %1213 }
 0x302   :  { %868 = vadd.xlane.f32.xlu1 %v867_v37  ;;  %v876_v38 = vsel %vm181_vm2, %v2263_v36, 0.0  ;;  %v1138_v46 = vpop.permute.xlu1 %1137 }
 0x303   :  { %877 = vadd.xlane.f32.xlu0 %v876_v38 }
 0x304   :  { %v2639_v39 = vpop.eup %2264 }
 0x305   :  { %v2641_v40 = vpop.eup %2266  ;;  %v879_v41 = vsel %vm181_vm2, %v2639_v39, 0.0 }
 0x306   :  { %v870_v42 = vsel %vm181_vm2, %v2641_v40, 0.0  ;;  %v1290_v47 = vpop.permute.xlu1 %1289 }
 0x307   :  { %880 = vadd.xlane.f32.xlu0 %v879_v41  ;;  %871 = vadd.xlane.f32.xlu1 %v870_v42 }
 0x308   :  { %v2647_v43 = vpop.eup %2268 }
 0x309   :  { %v882_v44 = vsel %vm181_vm2, %v2647_v43, 0.0 }
 0x30b   :  { %883 = vadd.xlane.f32.xlu0 %v882_v44 }
 0x318   :  { %1441 = vrot.lane.b32.xlu1 %v2550_v11, %s2406_s20 }
 0x321   :  { %1365 = vrot.lane.b32.xlu0 %v2554_v13, %s2406_s20 }
 0x383   :  { %v863_v49 = vpop.xlane.xlu1 %862 }
 0x384   :  { %2270 = vrcp.f32 %v863_v49 }
 0x387   :  { %v875_v50 = vpop.xlane.xlu0 %874 }
 0x388   :  { %2272 = vrcp.f32 %v875_v50 }
 0x38b   :  { %v866_v51 = vpop.xlane.xlu1 %865 }
 0x38c   :  { %2274 = vrcp.f32 %v866_v51 }
 0x38e   :  { %v2271_v52 = vpop.eup %2270 }
 0x38f   :  { %v886_v53 = vmul.f32 %v2271_v52, %v2255_v16  ;;  %v869_v54 = vpop.xlane.xlu1 %868  ;;  %v1550_v16 = vld [vmem:[%s2811_s4 + $0x8] sm:$0xff] }
 0x390   :  { %2276 = vrcp.f32 %v869_v54  ;;  %v878_v55 = vpop.xlane.xlu0 %877  ;;  %v2201_v18 = vpack.c.bf16 %v1550_v16, %v1549_v15  ;;  %v1786_v15 = vld [vmem:[%s2817_s10 + $0x20] sm:$0xff]  ;;  %v1787_v16 = vld [vmem:[%s2817_s10 + $0x28] sm:$0xff] }
 0x391   :  { %901 = vst.msk [vmem:[#allocation8] sm:$0xff] %vm181_vm2, %v886_v53  ;;  %2278 = vrcp.f32 %v878_v55  ;;  %2115 = vmatmul.mubr.msk.f32.vlgmr.msra.gmra.mrb[6].mxu0 %vm181_vm2, %v886_v53 }
 0x392   :  { %v2273_v11 = vpop.eup %2272  ;;  %2123 = vmatpush3.msra.mxu0 %v1062_v45  ;;  %2124 = vmatprep.mubr.msk.f32.mxu0 %vm2395_vm1, %v2394_v8 }
 0x393   :  { %v894_v13 = vmul.f32 %v2273_v11, %v2257_v24  ;;  %2132 = vmatprep.subr.mxu0 %v2394_v8 }
 0x394   :  { %v881_v56 = vpop.xlane.xlu0 %880  ;;  %v872_v57 = vpop.xlane.xlu1 %871 }
 0x395   :  { %905 = vst.msk [vmem:[#allocation8 + $0x20] sm:$0xff] %vm181_vm2, %v894_v13  ;;  %2280 = vrcp.f32 %v881_v56  ;;  %2120 = vmatmul.mubr.msk.f32.vlgmr.msra.gmra.mrb[12].mxu1 %vm181_vm2, %v894_v13 }
 0x396   :  { %v2275_v58 = vpop.eup %2274  ;;  %2282 = vrcp.f32 %v872_v57  ;;  %2128 = vmatpush3.msra.mxu1 %v1138_v46  ;;  %2129 = vmatprep.mubr.msk.f32.mxu1 %vm2395_vm1, %v2394_v8 }
 0x397   :  { %v888_v59 = vmul.f32 %v2275_v58, %v2259_v31  ;;  %2137 = vmatprep.subr.mxu1 %v2394_v8 }
 0x398   :  { %v884_v60 = vpop.xlane.xlu0 %883  ;;  %v1442_v9 = vpop.permute.xlu1 %1441 }
 0x399   :  { %902 = vst.msk [vmem:[#allocation8 + $0x8] sm:$0xff] %vm181_vm2, %v888_v59  ;;  %2284 = vrcp.f32 %v884_v60  ;;  %2125 = vmatmul.mubr.msk.f32.vlgmr.msra.gmra.mrb[8].mxu0 %vm181_vm2, %v888_v59 }
 0x39a   :  { %v2277_v61 = vpop.eup %2276  ;;  %2133 = vmatpush3.msra.mxu0 %v1214_v48  ;;  %2134 = vmatprep.mubr.msk.f32.mxu0 %vm2395_vm1, %v2394_v8 }
 0x39b   :  { %v2279_v62 = vpop.eup %2278  ;;  %v890_v63 = vmul.f32 %v2277_v61, %v2261_v35  ;;  %2142 = vmatprep.subr.mxu0 %v2394_v8 }
 0x39c   :  { %v896_v0 = vmul.f32 %v2279_v62, %v2263_v36  ;;  %v1366_v1 = vpop.permute.xlu0 %1365 }
 0x39d   :  { %903 = vst.msk [vmem:[#allocation8 + $0x10] sm:$0xff] %vm181_vm2, %v890_v63  ;;  %2135 = vmatmul.mubr.msk.f32.vlgmr.msra.gmra.mrb[10].mxu0 %vm181_vm2, %v890_v63  ;;  %v1689_v63 = vld [vmem:[%s2815_s8 + $0x8] sm:$0xff] }
 0x39e   :  { %906 = vst.msk [vmem:[#allocation8 + $0x28] sm:$0xff] %vm181_vm2, %v896_v0  ;;  %2130 = vmatmul.mubr.msk.f32.vlgmr.msra.gmra.mrb[14].mxu1 %vm181_vm2, %v896_v0  ;;  %2143 = vmatpush3.msra.mxu0 %v1366_v1  ;;  %v1690_v1 = vld [vmem:[%s2815_s8 + $0x10] sm:$0xff] }
 0x39f   :  { %v2281_v2 = vpop.eup %2280  ;;  %2138 = vmatpush3.msra.mxu1 %v1290_v47  ;;  %2139 = vmatprep.mubr.msk.f32.mxu1 %vm2395_vm1, %v2394_v8  ;;  %v1988_v47 = vld [vmem:[%s2812_s5] ss:$0 sm:$0xff] }
 0x3a0   :  { %v2283_v3 = vpop.eup %2282  ;;  %v898_v4 = vmul.f32 %v2281_v2, %v2639_v39  ;;  %2147 = vmatprep.subr.mxu1 %v2394_v8  ;;  %2144 = vmatprep.mubr.msk.f32.mxu0 %vm2395_vm1, %v2394_v8  ;;  %v1691_v2 = vld [vmem:[%s2815_s8 + $0x18] sm:$0xff] }
 0x3a1   :  { %v892_v6 = vmul.f32 %v2283_v3, %v2641_v40  ;;  %2202 = vmatprep.subr.bf16.mxu0 %v2201_v18  ;;  %v2213_v3 = vpack.c.bf16 %v1691_v2, %v1690_v1 }
 0x3a2   :  { %907 = vst.msk [vmem:[#allocation8 + $0x30] sm:$0xff] %vm181_vm2, %v898_v4  ;;  %2140 = vmatmul.mubr.msk.f32.vlgmr.msra.gmra.mrb[16].mxu1 %vm181_vm2, %v898_v4  ;;  %v1782_v4 = vld [vmem:[%s2817_s10] sm:$0xff] }
 0x3a3   :  { %v2285_v10 = vpop.eup %2284  ;;  %904 = vst.msk [vmem:[#allocation8 + $0x18] sm:$0xff] %vm181_vm2, %v892_v6  ;;  %2148 = vmatpush3.msra.mxu1 %v1442_v9  ;;  %2145 = vmatmul.mubr.msk.f32.vlgmr.msra.gmra.mrb[12].mxu0 %vm181_vm2, %v892_v6  ;;  %v1783_v6 = vld [vmem:[%s2817_s10 + $0x8] sm:$0xff]  ;;  %v1784_v9 = vld [vmem:[%s2817_s10 + $0x10] sm:$0xff] }
 0x3a4   :  { %v900_v12 = vmul.f32 %v2285_v10, %v2647_v43  ;;  %2149 = vmatprep.mubr.msk.f32.mxu1 %vm2395_vm1, %v2394_v8  ;;  %2204 = vmatpush3.bf16.msra.mxu0 %v2201_v18  ;;  %v1551_v8 = vld [vmem:[%s2811_s4 + $0x10] sm:$0xff]  ;;  %s2408_s4 = smov 24   ;;  %v2217_v10 = vpack.c.bf16 %v1783_v6, %v1782_v4 }
 0x3a5   :  { %v2205_v22 = vpack.c.bf16 %v1552_v20, %v1551_v8 }
 0x3a6   :  { %908 = vst.msk [vmem:[#allocation8 + $0x38] sm:$0xff] %vm181_vm2, %v900_v12  ;;  %2150 = vmatmul.mubr.msk.f32.vlgmr.msra.gmra.mrb[18].mxu1 %vm181_vm2, %v900_v12  ;;  %v1785_v12 = vld [vmem:[%s2817_s10 + $0x18] sm:$0xff] }
 0x3a7   :  { %2206 = vmatprep.subr.bf16.mxu0 %v2205_v22 }
 0x3a8   :  { %2208 = vmatpush3.bf16.msra.mxu0 %v2205_v22 }
 0x3a9   :  { %2218 = vmatprep.subr.bf16.mxu0 %v2217_v10 }
 0x464   :  { %v981_v14 = vpop.f32.mrb[6].mxu0 }
 0x465   :  { %v2116_v17 = vpop.f32.mrb[7].mxu0 }
 0x466   :  { %v2225_v17 = vpack.c.bf16 %v1787_v16, %v1786_v15 }
 0x468   :  { %v1057_v19 = vpop.f32.mrb[12].mxu1 }
 0x469   :  { %v2121_v21 = vpop.f32.mrb[13].mxu1 }
 0x46c   :  { %v1133_v23 = vpop.f32.mrb[8].mxu0 }
 0x46d   :  { %v2126_v24 = vpop.f32.mrb[9].mxu0  ;;  %1519 = vrot.lane.b32.xlu0 %v1133_v23, %s2392_s29 }
 0x46e   :  { %v1991_v24 = vld [vmem:[%s2813_s6] ss:$0 sm:$0xff] }
 0x470   :  { %v1285_v25 = vpop.f32.mrb[10].mxu0 }
 0x471   :  { %v1209_v26 = vpop.f32.mrb[14].mxu1  ;;  %1527 = vrot.lane.b32.xlu0 %v1285_v25, %s2407_s26  ;;  %v2136_v27 = vpop.f32.mrb[11].mxu0 }
 0x472   :  { %1521 = vrot.lane.b32.xlu1 %v1209_v26, %s2392_s29  ;;  %v2131_v28 = vpop.f32.mrb[15].mxu1  ;;  %v1992_v26 = vld [vmem:[%s2814_s7] ss:$0 sm:$0xff] }
 0x475   :  { %v1361_v29 = vpop.f32.mrb[16].mxu1 }
 0x476   :  { %1529 = vrot.lane.b32.xlu1 %v1361_v29, %s2407_s26  ;;  %v2141_v30 = vpop.f32.mrb[17].mxu1  ;;  %v1437_v31 = vpop.f32.mrb[12].mxu0 }
 0x477   :  { %1535 = vrot.lane.b32.xlu0 %v1437_v31, %s2408_s4  ;;  %v2146_v32 = vpop.f32.mrb[13].mxu0 }
 0x479   :  { %v1513_v33 = vpop.f32.mrb[18].mxu1 }
 0x47a   :  { %1537 = vrot.lane.b32.xlu1 %v1513_v33, %s2408_s4  ;;  %v2151_v34 = vpop.f32.mrb[19].mxu1  ;;  %v1788_v33 = vld [vmem:[%s2817_s10 + $0x30] sm:$0xff] }
 0x47b   :  { %v1789_v34 = vld [vmem:[%s2817_s10 + $0x38] sm:$0xff] }
 0x4df   :  { %v1520_v35 = vpop.permute.xlu0 %1519 }
 0x4e0   :  { %v1541_v38 = vsel %vm181_vm2, %v981_v14, %v1520_v35  ;;  %v2221_v14 = vpack.c.bf16 %v1785_v12, %v1784_v9  ;;  %v2229_v35 = vpack.c.bf16 %v1789_v34, %v1788_v33 }
 0x4e3   :  { %v1528_v36 = vpop.permute.xlu0 %1527 }
 0x4e4   :  { %v1522_v37 = vpop.permute.xlu1 %1521  ;;  %v1544_v40 = vsel %vm1543_vm5, %v1541_v38, %v1528_v36  ;;  %v1993_v36 = vld [vmem:[%s2816_s9] ss:$0 sm:$0xff]  ;;  %s2409_s9 = smov [#allocation8]  }
 0x4e5   :  { %v1542_v43 = vsel %vm181_vm2, %v1057_v19, %v1522_v37  ;;  %s1944_s10 = sshll.u32 %s2409_s9, 4  ;;  %s1945_s10 = int_to_ptr.vmem [resolvable:$true] %s1944_s10 }
 0x4e6   :  { %p2343_p3 = scmp.lt.s32.totalorder %s1945_s10, %s1945_s10 }
 0x4e8   :  { %v1530_v39 = vpop.permute.xlu1 %1529 }
 0x4e9   :  { %v1536_v41 = vpop.permute.xlu0 %1535  ;;  %v1545_v44 = vsel %vm1543_vm5, %v1542_v43, %v1530_v39  ;;  %v1996_v43 = vld [vmem:[%s2818_s11] ss:$0 sm:$0xff]  ;;  %s2338_s11 = scalar_lea.vmem %s1945_s10, 1024 }
 0x4ea   :  { %v1547_v42 = vsel %vm1546_vm6, %v1544_v40, %v1536_v41  ;;  %p2339_p2 = scmp.ne.s32.totalorder %s1945_s10, %s2338_s11  ;;  %p2344_p4 = scmp.lt.s32.totalorder %s2338_s11, %s2338_s11 }
 0x4eb   :  { %2160 = vmatprep.mubr.msk.f32.mxu0 %vm96_vm0, %v1547_v42 }
 0x4ec   :  { %v1538_v45 = vpop.permute.xlu1 %1537  ;;  %p2345_p5 = por %p2344_p4, %p2343_p3 }
 0x4ed   :  { %v1548_v46 = vsel %vm1546_vm6, %v1545_v44, %v1538_v45 }
 0x4ee   :  { %2161 = vmatmul.mubr.msk.f32.vlgmr.msra.gmra.mrb[14].mxu0 %vm96_vm0, %v1548_v46  ;;  %p2346_p6 = pnand %p2345_p5, %p2339_p2 }
 0x4ef   :  { %2220 = vmatpush3.bf16.msra.mxu0 %v2217_v10 }
 0x4f0   :  { %2222 = vmatprep.subr.bf16.mxu0 %v2221_v14 }
 0x4f3   :  { %2224 = vmatpush3.bf16.msra.mxu0 %v2221_v14 }
 0x4f4   :  { %2226 = vmatprep.subr.bf16.mxu0 %v2225_v17 }
 0x4f7   :  { %2228 = vmatpush3.bf16.msra.mxu0 %v2225_v17 }
 0x4f8   :  { %2230 = vmatprep.subr.bf16.mxu0 %v2229_v35 }
 0x4fb   :  { %2232 = vmatpush3.bf16.msra.mxu0 %v2229_v35 }
 0x5c1   :  { %v2162_v48 = vpop.f32.mrb[14].mxu0 }
 0x5c2   :  { %v1638_v49 = vadd.f32 %v2162_v48, %v1988_v47  ;;  %v1632_v50 = vpop.f32.mrb[15].mxu0 }
 0x5c3   :  { %v1633_v51 = vadd.f32 %v1988_v47, %v1632_v50 }
 0x5c4   :  { %v1642_v52 = vadd.f32 %v1638_v49, %v2537_v7 }
 0x5c5   :  { %v1641_v53 = vadd.f32 %v1633_v51, %v2533_v5  ;;  %v1688_v5 = vld [vmem:[%s2815_s8] sm:$0xff] }
 0x5c6   :  { %v1648_v54 = vsel %vm96_vm0, %v1642_v52, 0.0  ;;  %v2209_v0 = vpack.c.bf16 %v1689_v63, %v1688_v5 }
 0x5c7   :  { %1649 = vadd.xlane.f32.xlu1 %v1648_v54  ;;  %v1645_v55 = vsel %vm96_vm0, %v1641_v53, 0.0 }
 0x5c8   :  { %1646 = vadd.xlane.f32.xlu0 %v1645_v55  ;;  %2210 = vmatprep.subr.bf16.mxu1 %v2209_v0 }
 0x5c9   :  { %2212 = vmatpush3.bf16.msra.mxu1 %v2209_v0 }
 0x5ca   :  { %2214 = vmatprep.subr.bf16.mxu1 %v2213_v3 }
 0x5cd   :  { %2216 = vmatpush3.bf16.msra.mxu1 %v2213_v3 }
 0x654   :  { %v1650_v11 = vpop.xlane.xlu1 %1649 }
 0x655   :  { %v1653_v13 = vmul.f32 0.03125, %v1650_v11  ;;  %v1647_v56 = vpop.xlane.xlu0 %1646 }
 0x656   :  { %v1652_v57 = vmul.f32 0.03125, %v1647_v56 }
 0x657   :  { %v1655_v58 = vsub.f32 %v1642_v52, %v1653_v13 }
 0x658   :  { %v1654_v59 = vsub.f32 %v1641_v53, %v1652_v57 }
 0x659   :  { %v1657_v62 = vmul.f32 %v1655_v58, %v1655_v58 }
 0x65a   :  { %v1656_v60 = vmul.f32 %v1654_v59, %v1654_v59 }
 0x65b   :  { %v1661_v7 = vsel %vm96_vm0, %v1657_v62, 0.0 }
 0x65c   :  { %v1658_v61 = vsel %vm96_vm0, %v1656_v60, 0.0 }
 0x65d   :  { %1659 = vadd.xlane.f32.xlu0 %v1658_v61 }
 0x661   :  { %1662 = vadd.xlane.f32.xlu0 %v1661_v7 }
 0x6ea   :  { %v1660_v18 = vpop.xlane.xlu0 %1659 }
 0x6eb   :  { %v1664_v19 = vmul.f32 0.03125, %v1660_v18 }
 0x6ed   :  { %v1666_v8 = vadd.f32 1e-05, %v1664_v19 }
 0x6ee   :  { %v1663_v20 = vpop.xlane.xlu0 %1662 }
 0x6ef   :  { %2286 = vrsqrt.f32 %v1666_v8  ;;  %v1665_v21 = vmul.f32 0.03125, %v1663_v20 }
 0x6f1   :  { %v1667_v22 = vadd.f32 1e-05, %v1665_v21 }
 0x6f3   :  { %2288 = vrsqrt.f32 %v1667_v22 }
 0x6f9   :  { %v2287_v23 = vpop.eup %2286 }
 0x6fa   :  { %v1670_v25 = vmul.f32 %v2287_v23, %v1654_v59 }
 0x6fc   :  { %v1678_v27 = vmul.f32 %v1991_v24, %v1670_v25 }
 0x6fd   :  { %v2289_v28 = vpop.eup %2288 }
 0x6fe   :  { %v1671_v29 = vmul.f32 %v2289_v28, %v1655_v58  ;;  %v1686_v30 = vadd.f32 %v1992_v26, %v1678_v27 }
 0x700   :  { %v1679_v31 = vmul.f32 %v1991_v24, %v1671_v29  ;;  %2171 = vmatprep.mubr.msk.f32.mxu1 %vm96_vm0, %v1686_v30 }
 0x702   :  { %v1687_v32 = vadd.f32 %v1992_v26, %v1679_v31 }
 0x704   :  { %2172 = vmatmul.mubr.msk.f32.vlgmr.msra.gmra.mrb[20].mxu1 %vm96_vm0, %v1687_v32 }
 0x7d7   :  { %v2173_v37 = vpop.f32.mrb[20].mxu1 }
 0x7d8   :  { %v1777_v38 = vadd.f32 %v2173_v37, %v1993_v36  ;;  %v1771_v39 = vpop.f32.mrb[21].mxu1 }
 0x7d9   :  { %v1772_v40 = vadd.f32 %v1993_v36, %v1771_v39 }
 0x7da   :  { %v1781_v42 = vmax.f32 %v1777_v38, 0.0 }
 0x7db   :  { %v1780_v41 = vmax.f32 %v1772_v40, 0.0 }
 0x7dd   :  { %2190 = vmatprep.mubr.msk.f32.mxu0 %vm1797_vm7, %v1780_v41 }
 0x7de   :  { %2191 = vmatmul.mubr.msk.f32.vlgmr.msra.gmra.mrb[16].mxu0 %vm1797_vm7, %v1781_v42 }
 0x8b1   :  { %v2192_v44 = vpop.f32.mrb[16].mxu0 }
 0x8b2   :  { %v1876_v45 = vadd.f32 %v2192_v44, %v1996_v43  ;;  %v1870_v46 = vpop.f32.mrb[17].mxu0 }
 0x8b3   :  { %v1871_v47 = vadd.f32 %v1996_v43, %v1870_v46 }
 0x8b4   :  { %v1880_v48 = vadd.f32 %v1876_v45, %v1687_v32 }
 0x8b5   :  { %v1879_v49 = vadd.f32 %v1871_v47, %v1686_v30 }
 0x8b6   :  { %v1886_v50 = vsel %vm96_vm0, %v1880_v48, 0.0 }
 0x8b7   :  { %1887 = vadd.xlane.f32.xlu0 %v1886_v50  ;;  %v1883_v51 = vsel %vm96_vm0, %v1879_v49, 0.0 }
 0x8b8   :  { %1884 = vadd.xlane.f32.xlu1 %v1883_v51 }
 0x944   :  { %v1888_v52 = vpop.xlane.xlu0 %1887 }
 0x945   :  { %v1890_v53 = vmul.f32 0.03125, %v1888_v52  ;;  %v1885_v54 = vpop.xlane.xlu1 %1884 }
 0x946   :  { %v1889_v55 = vmul.f32 0.03125, %v1885_v54 }
 0x947   :  { %v1892_v11 = vsub.f32 %v1880_v48, %v1890_v53 }
 0x948   :  { %v1891_v13 = vsub.f32 %v1879_v49, %v1889_v55 }
 0x949   :  { %v1894_v56 = vmul.f32 %v1892_v11, %v1892_v11 }
 0x94a   :  { %v1893_v57 = vmul.f32 %v1891_v13, %v1891_v13 }
 0x94b   :  { %v1898_v58 = vsel %vm96_vm0, %v1894_v56, 0.0 }
 0x94c   :  { %1899 = vadd.xlane.f32.xlu0 %v1898_v58  ;;  %v1895_v59 = vsel %vm96_vm0, %v1893_v57, 0.0 }
 0x94d   :  { %1896 = vadd.xlane.f32.xlu1 %v1895_v59 }
 0x94e   :  { %2349 = shalt.err (!%p2346_p6)
}
 0x94f   :  { %s2350_s18 = scalar_lea.hbm %s2822_s15, 1024 }
 0x950   :  { %p2351_p7 = scmp.ne.s32.totalorder %s2822_s15, %s2350_s18  ;;  %p2354_p8 = scmp.lt.u32.totalorder %s2350_s18, %s2822_s15 }
 0x952   :  { %p2356_p9 = pnand %p2354_p8, %p2351_p7 }
 0x954   :  { %2359 = shalt.err (!%p2356_p9)
}
 0x955   :  { %1950 = dma.vmem_to_hbm [thread:$0]  %s1945_s10, 1024, %s2822_s15, [#allocation9], %s2391_s28, %s2391_s28, %s2392_s29  }
 0x956   :  { %v1999_v1 = vld [vmem:[%s2819_s12] ss:$0 sm:$0xff]  ;;  %s2410_s15 = smov [#allocation7]  }
 0x957   :  { %v2000_v6 = vld [vmem:[%s2820_s13] ss:$0 sm:$0xff]  ;;  %s1932_s30 = sshll.u32 %s2410_s15, 4  ;;  %s1933_s30 = int_to_ptr.vmem [resolvable:$true] %s1932_s30 }
 0x958   :  { %s2360_s16 = scalar_lea.vmem %s1933_s30, 256  ;;  %p2365_p11 = scmp.lt.s32.totalorder %s1933_s30, %s1933_s30 }
 0x959   :  { %p2361_p10 = scmp.ne.s32.totalorder %s1933_s30, %s2360_s16  ;;  %p2366_p12 = scmp.lt.s32.totalorder %s2360_s16, %s2360_s16 }
 0x95b   :  { %p2367_p13 = por %p2366_p12, %p2365_p11 }
 0x95d   :  { %p2368_p0 = pnand %p2367_p13, %p2361_p10 }
 0x9d9   :  { %v1900_v60 = vpop.xlane.xlu0 %1899 }
 0x9da   :  { %v1902_v61 = vmul.f32 0.03125, %v1900_v60  ;;  %v1897_v62 = vpop.xlane.xlu1 %1896 }
 0x9db   :  { %v1901_v7 = vmul.f32 0.03125, %v1897_v62 }
 0x9dc   :  { %v1904_v5 = vadd.f32 1e-05, %v1902_v61 }
 0x9dd   :  { %v1903_v63 = vadd.f32 1e-05, %v1901_v7 }
 0x9de   :  { %2290 = vrsqrt.f32 %v1904_v5 }
 0x9df   :  { %2292 = vrsqrt.f32 %v1903_v63 }
 0x9e8   :  { %v2291_v0 = vpop.eup %2290 }
 0x9e9   :  { %v2293_v2 = vpop.eup %2292  ;;  %v1908_v3 = vmul.f32 %v2291_v0, %v1892_v11 }
 0x9ea   :  { %v1907_v4 = vmul.f32 %v2293_v2, %v1891_v13 }
 0x9eb   :  { %v1916_v9 = vmul.f32 %v1999_v1, %v1908_v3 }
 0x9ec   :  { %v1915_v10 = vmul.f32 %v1999_v1, %v1907_v4 }
 0x9ed   :  { %v1924_v12 = vadd.f32 %v2000_v6, %v1916_v9 }
 0x9ee   :  { %v1923_v14 = vadd.f32 %v2000_v6, %v1915_v10 }
 0x9ef   :  { %1926 = vst.msk [vmem:[#allocation7 + $0x8] sm:$0xff] %vm96_vm0, %v1924_v12 }
 0x9f0   :  { %1925 = vst.msk [vmem:[#allocation7] sm:$0xff] %vm96_vm0, %v1923_v14 }
 0x9f1   :  { %2371 = shalt.err (!%p2368_p0)
}
 0x9f2   :  { %s2372_s17 = scalar_lea.hbm %s2821_s14, 256 }
 0x9f3   :  { %p2373_p1 = scmp.ne.s32.totalorder %s2821_s14, %s2372_s17  ;;  %p2376_p2 = scmp.lt.u32.totalorder %s2372_s17, %s2821_s14 }
 0x9f5   :  { %p2378_p3 = pnand %p2376_p2, %p2373_p1 }
 0x9f7   :  { %2381 = shalt.err (!%p2378_p3)
}
 0x9f8   :  { %1938 = dma.vmem_to_hbm [thread:$0]  %s1933_s30, 256, %s2821_s14, [#allocation4], %s2391_s28, %s2391_s28, %s2392_s29  }
 0x9f9   :  { %2386 = dma.done.wait [#allocation4], 256  }
 0x9fa   :  { %2387 = vsyncadd [#allocation4], 4294967040 }
 0x9fb   :  { %2388 = dma.done.wait [#allocation9], 1024  }
 0x9fc   :  { %2389 = vsyncadd [#allocation9], 4294966272 }
 0x9fd   :  { %1957 = vsyncpa [#allocation3], 1 }
 0x9fe   :  { %1958 = vsyncpa [#allocation6], 1 }
 0x9ff   :  { %1959 = vsyncpa [#allocation4], 1 }
 0xa00   :  { %1960 = vsyncpa [#allocation9], 1 }

</bundles_post_ra>
